<compile_context>
chip_gen: v6e
topology: v6e:2x2x1
jax: 0.10.0
libtpu: 0.0.40
codegen_flags: <defaults>
</compile_context>

<pallas_src>
import functools

import jax
import jax.numpy as jnp
from jax import lax
from jax.experimental import pallas as pl
from jax.experimental.pallas import tpu as pltpu


def _slab_loss(x_ref, inds_ref, *, row0, sub, c_fold, with_logits, valid_rows):
    """BCE loss for one `sub`-row slab of the tile, folded to (8, c_fold)."""
    C = x_ref.shape[1]
    K = inds_ref.shape[1]
    if isinstance(row0, int):
        start = row0
    else:
        start = pl.multiple_of(row0, sub)

    x = x_ref[pl.ds(start, sub), :].astype(jnp.float32)        # (sub, C)
    inds = inds_ref[pl.ds(start, sub), :]                       # (sub, K)

    # targets = zeros(sub, C+1).scatter_(1, inds, 1)[:, :-1]
    # <=> tgt_mask[n, c] = any_k(inds[n, k] == c) for c in [0, C).
    # An index of C (the dropped dump/padding column) never matches and
    # duplicates are idempotent.  Boolean mask only — no float targets.
    col_ids = lax.broadcasted_iota(jnp.int32, (sub, C), 1)
    tgt_mask = col_ids == inds[:, 0:1]
    for k in range(1, K):                                       # K small & static
        tgt_mask = jnp.logical_or(tgt_mask, col_ids == inds[:, k:k + 1])
    # TODO(synk): if a bundle dump shows the VALU slot binding (v5e/v6e f32),
    # switch to the algebraic split sum_c softplus(x_c) - sum_{k, ind_k<C} x[ind_k].

    if with_logits:
        # Stable BCEWithLogits: max(x,0) - x*t + log1p(exp(-|x|)); t in {0,1},
        # so x*t is a SELECT (never a multiply -> no NaN leakage from OOB rows).
        elem = (jnp.maximum(x, 0.0)
                - jnp.where(tgt_mask, x, 0.0)
                + jnp.log1p(jnp.exp(-jnp.abs(x))))
        # TODO(synk): on v7x, if EUP-bound, evaluate log1p(exp(-|x|)) in bf16
        # (bf16 EUP) with f32 accumulation; needs accuracy validation.
    else:
        # Plain BCE on probabilities; PyTorch clamps the log terms at -100.
        log_x = jnp.maximum(jnp.log(x), -100.0)
        log_1mx = jnp.maximum(jnp.log(1.0 - x), -100.0)
        elem = jnp.where(tgt_mask, -log_x, -log_1mx)

    if valid_rows is not None and valid_rows < sub:
        # Static partial-slab mask: only the final slab of the last tile pays
        # this, and it stays a select so garbage rows can't propagate NaN.
        row_in_slab = lax.broadcasted_iota(jnp.int32, (sub, C), 0)
        elem = jnp.where(row_in_slab < valid_rows, elem, 0.0)

    # Fold rows sub -> 8 and columns C -> c_fold with pure full-vreg VPU adds.
    folded = elem[0:8, :]
    for r in range(1, sub // 8):
        folded = folded + elem[r * 8:(r + 1) * 8, :]
    out = folded[:, 0:c_fold]
    for c in range(1, C // c_fold):
        out = out + folded[:, c * c_fold:(c + 1) * c_fold]
    return out


def _ova_bce_kernel(x_ref, inds_ref, part_ref, acc_ref, *,
                    n_rows, sub, c_fold, with_logits):
    """One row tile: slab loop -> (8, c_fold) partial, lane-dense store."""
    i = pl.program_id(0)
    tm = x_ref.shape[0]
    num_tiles = pl.cdiv(n_rows, tm)              # static Python ints
    tail_rows = n_rows - (num_tiles - 1) * tm    # rows in the last tile (1..tm)

    acc_ref[...] = jnp.zeros_like(acc_ref)

    slab = functools.partial(_slab_loss, x_ref, inds_ref, sub=sub,
                             c_fold=c_fold, with_logits=with_logits)

    def run(n_full_slabs, rem_rows):
        if n_full_slabs > 0:
            def body(s, carry):
                acc_ref[...] += slab(row0=s * sub, valid_rows=None)
                return carry
            lax.fori_loop(0, n_full_slabs, body, 0)
        if rem_rows > 0:
            acc_ref[...] += slab(row0=n_full_slabs * sub, valid_rows=rem_rows)

    if tail_rows == tm:
        run(tm // sub, 0)                          # N % tm == 0: no masked path
    elif num_tiles == 1:
        run(tail_rows // sub, tail_rows % sub)     # single, partial tile
    else:
        last = num_tiles - 1

        @pl.when(i < last)
        def _():
            run(tm // sub, 0)                      # full tiles: zero mask cost

        @pl.when(i == last)
        def _():
            run(tail_rows // sub, tail_rows % sub)

    part_ref[...] = acc_ref[...][None, :, :]


def _pick_c_fold(C):
    """Largest of 512/256/128 lanes that divides C (else C): lane-dense store."""
    for cf in (512, 256, 128):
        if C > cf and C % cf == 0:
            return cf
    return C


def _vmem_limits():
    """(scoped vmem_limit_bytes, input-tile budget), generation-aware."""
    try:
        phys = int(pltpu.get_tpu_info().vmem_capacity_bytes)
        scoped = (phys * 3) // 4          # ~48 MiB on v7x, ~96 MiB on v5e/v6e
    except Exception:
        scoped = 32 * 1024 * 1024         # conservative fallback, all gens
    return scoped, scoped // 2            # half for (double-buffered) inputs


def ova_bce_loss(logits, inds, *, with_logits=True, tm=None):
    """Pallas implementation of OvABCELoss.forward given model(b)'s output.

    logits: (N, C) float32/bfloat16 model output; inds: (N, K) integer label
    indices in [0, C] (value == C is the dropped 'dump' column).
    Returns the scalar mean loss (float32).
    """
    N, C = logits.shape
    K = inds.shape[1]
    inds = inds.astype(jnp.int32)

    sub = 16 if logits.dtype == jnp.bfloat16 else 8    # sublane packing
    c_fold = _pick_c_fold(C)
    vmem_limit, input_budget = _vmem_limits()

    if tm is None:
        # Per row, per buffer: logits (C * itemsize) + lane-padded int32 inds
        # tile (K pads to 128 lanes -> 512 B); x2 for double buffering.
        bytes_per_row = 2 * (C * logits.dtype.itemsize + 128 * 4)
        tm = input_budget // max(1, bytes_per_row)
    tm = max(sub, (tm // sub) * sub)
    tm = min(tm, pl.cdiv(N, sub) * sub)                # never exceed padded N
    # Keep >= 2 grid steps when possible so both v7x TensorCores get work.
    tm = max(sub, min(tm, pl.cdiv(N, 2 * sub) * sub))
    # TODO(synk): add a second grid axis over C (multiples of 128) for class
    # counts so large that even a `sub`-row tile exceeds the VMEM budget.

    num_tiles = pl.cdiv(N, tm)
    kernel = functools.partial(_ova_bce_kernel, n_rows=N, sub=sub,
                               c_fold=c_fold, with_logits=with_logits)

    cost = pl.CostEstimate(
        flops=(2 * K + 10) * N * C,
        transcendentals=2 * N * C,
        bytes_accessed=(N * C * logits.dtype.itemsize + N * K * 4
                        + num_tiles * 8 * c_fold * 4))

    partials = pl.pallas_call(
        kernel,
        out_shape=jax.ShapeDtypeStruct((num_tiles, 8, c_fold), jnp.float32),
        grid_spec=pltpu.PrefetchScalarGridSpec(
            num_scalar_prefetch=0,
            grid=(num_tiles,),
            in_specs=[
                pl.BlockSpec((tm, C), lambda i: (i, 0)),   # logits row tile
                pl.BlockSpec((tm, K), lambda i: (i, 0)),   # label-index tile
            ],
            out_specs=pl.BlockSpec((1, 8, c_fold), lambda i: (i, 0, 0)),
            scratch_shapes=[pltpu.VMEM((8, c_fold), jnp.float32)],
        ),
        compiler_params=pltpu.CompilerParams(
            dimension_semantics=("parallel",),             # no cross-tile carry
            vmem_limit_bytes=vmem_limit),
        cost_estimate=cost,
    )(logits, inds)

    # reduction='mean' over all N*C elements; masked tail rows are exact zeros.
    return jnp.sum(partials) / float(N * C)


def _reference_loss(logits, inds, with_logits=True):
    """Pure-JAX reference mirroring the PyTorch forward."""
    N, C = logits.shape
    x = logits.astype(jnp.float32)
    tgt_full = jnp.zeros((N, C + 1), jnp.float32)
    rows = jnp.arange(N)[:, None]
    tgt_full = tgt_full.at[rows, inds].set(1.0)
    tgt = tgt_full[:, :-1]
    if with_logits:
        elem = jnp.maximum(x, 0.0) - x * tgt + jnp.log1p(jnp.exp(-jnp.abs(x)))
    else:
        log_x = jnp.maximum(jnp.log(x), -100.0)
        log_1mx = jnp.maximum(jnp.log(1.0 - x), -100.0)
        elem = -(tgt * log_x + (1.0 - tgt) * log_1mx)
    return jnp.mean(elem)


if __name__ == "__main__":
    key = jax.random.PRNGKey(0)
    k1, k2, k3, k4 = jax.random.split(key, 4)

    # Small shapes implied by the module: N=40 rows, C=128 classes, up to K=3
    # labels per row.  "model(b)" stand-in: deterministic random logits.
    N, C, K = 40, 128, 3
    logits = jax.random.normal(k1, (N, C), dtype=jnp.float32)
    inds = jax.random.randint(k2, (N, K), 0, C + 1, dtype=jnp.int32)
    ref = _reference_loss(logits, inds)

    # 1) Default VMEM-budgeted tile (also exercises the tail-tile path).
    loss = jax.block_until_ready(ova_bce_loss(logits, inds, with_logits=True))
    assert jnp.allclose(loss, ref, atol=1e-5, rtol=1e-5), (loss, ref)

    # 2) Small explicit tile: multi-tile grid + gated tail masking.
    loss_small = jax.block_until_ready(ova_bce_loss(logits, inds, tm=16))
    assert jnp.allclose(loss_small, ref, atol=1e-5, rtol=1e-5), (loss_small, ref)

    # 3) bf16 logits stream (16-row slabs; compute stays f32).
    logits_bf16 = logits.astype(jnp.bfloat16)
    ref_bf16 = _reference_loss(logits_bf16, inds)
    loss_bf16 = jax.block_until_ready(ova_bce_loss(logits_bf16, inds))
    assert jnp.allclose(loss_bf16, ref_bf16, atol=1e-5, rtol=1e-5), (
        loss_bf16, ref_bf16)

    # 4) loss_with_logits=False branch (plain BCE on probabilities).
    probs = jax.nn.sigmoid(logits)
    ref_bce = _reference_loss(probs, inds, with_logits=False)
    loss_bce = jax.block_until_ready(
        ova_bce_loss(probs, inds, with_logits=False))
    assert jnp.allclose(loss_bce, ref_bce, atol=1e-5, rtol=1e-5), (
        loss_bce, ref_bce)

    # 5) Larger case: exercises the C-fold (1024 -> 512 lanes), the multi-slab
    #    fori_loop, and a partial final slab on the tail tile.
    N2, C2, K2 = 300, 1024, 5
    logits2 = jax.random.normal(k3, (N2, C2), dtype=jnp.float32)
    inds2 = jax.random.randint(k4, (N2, K2), 0, C2 + 1, dtype=jnp.int32)
    ref2 = _reference_loss(logits2, inds2)
    loss2 = jax.block_until_ready(ova_bce_loss(logits2, inds2))
    assert jnp.allclose(loss2, ref2, atol=1e-5, rtol=1e-4), (loss2, ref2)

    print("KERNEL_OK")
</pallas_src>

<mosaic_0001>
module attributes {stable_mosaic.version = 11 : i64} {
  func.func @_ova_bce_kernel(%arg0: i32, %arg1: memref<24x128xf32, #tpu.memory_space<vmem>>, %arg2: memref<24x3xi32, #tpu.memory_space<vmem>>, %arg3: memref<1x8x128xf32, #tpu.memory_space<vmem>>, %arg4: memref<8x128xf32, #tpu.memory_space<vmem>>) attributes {dimension_semantics = [#tpu.dimension_semantics<parallel>], iteration_bounds = array<i64: 2>, scalar_prefetch = 0 : i64, scratch_operands = 1 : i64, tpu.core_type = #tpu.core_type<tc>, window_params = [{transform_indices = @transform_0, window_bounds = array<i64: 24, 128>}, {transform_indices = @transform_1, window_bounds = array<i64: 24, 3>}, {transform_indices = @transform_2, window_bounds = array<i64: 1, 8, 128>}]} {
    %cst = arith.constant 0.000000e+00 : f32
    %0 = vector.broadcast %cst : f32 to vector<8x128xf32>
    %c0 = arith.constant 0 : index
    %c0_0 = arith.constant 0 : index
    %1 = vector.load %arg4[%c0, %c0_0] : memref<8x128xf32, #tpu.memory_space<vmem>>, vector<8x128xf32>
    tpu.vector_store %arg4[%c0, %c0_0], %0 {strides = array<i32>} : memref<8x128xf32, #tpu.memory_space<vmem>>, vector<8x128xf32>,
    %c1_i32 = arith.constant 1 : i32
    %2 = arith.cmpi slt, %arg0, %c1_i32 : i32
    %3 = arith.extui %2 : i1 to i32
    %c0_i32 = arith.constant 0 : i32
    %4 = arith.cmpi ne, %3, %c0_i32 : i32
    scf.if %4 {
      %c0_i32_8 = arith.constant 0 : i32
      %c3_i32 = arith.constant 3 : i32
      %11 = arith.addi %c0_i32_8, %c3_i32 : i32
      %c1_i32_9 = arith.constant 1 : i32
      scf.for %arg5 = %c0_i32_8 to %11 step %c1_i32_9  : i32 {
        %c0_11 = arith.constant 0 : index
        %c0_12 = arith.constant 0 : index
        %12 = vector.load %arg4[%c0_11, %c0_12] : memref<8x128xf32, #tpu.memory_space<vmem>>, vector<8x128xf32>
        %c8_i32 = arith.constant 8 : i32
        %13 = arith.muli %arg5, %c8_i32 : i32
        %14 = tpu.assume_multiple %13, 8 : i32
        %15 = arith.index_cast %14 : i32 to index
        %c0_13 = arith.constant 0 : index
        %16 = vector.load %arg1[%15, %c0_13] : memref<24x128xf32, #tpu.memory_space<vmem>>, vector<8x128xf32>
        %17 = arith.index_cast %14 : i32 to index
        %c0_14 = arith.constant 0 : index
        %18 = vector.load %arg2[%17, %c0_14] : memref<24x3xi32, #tpu.memory_space<vmem>>, vector<8x3xi32>
        %19 = tpu.iota {dimensions = array<i32: 1>} : vector<8x128xi32>
        %20 = vector.extract_strided_slice %18 {offsets = [0, 0], sizes = [8, 1], strides = [1, 1]} : vector<8x3xi32> to vector<8x1xi32>
        %21 = vector.broadcast %20 : vector<8x1xi32> to vector<8x128xi32>
        %22 = arith.cmpi eq, %19, %21 : vector<8x128xi32>
        %23 = vector.extract_strided_slice %18 {offsets = [0, 1], sizes = [8, 1], strides = [1, 1]} : vector<8x3xi32> to vector<8x1xi32>
        %24 = vector.broadcast %23 : vector<8x1xi32> to vector<8x128xi32>
        %25 = arith.cmpi eq, %19, %24 : vector<8x128xi32>
        %26 = arith.ori %22, %25 : vector<8x128xi1>
        %27 = vector.extract_strided_slice %18 {offsets = [0, 2], sizes = [8, 1], strides = [1, 1]} : vector<8x3xi32> to vector<8x1xi32>
        %28 = vector.broadcast %27 : vector<8x1xi32> to vector<8x128xi32>
        %29 = arith.cmpi eq, %19, %28 : vector<8x128xi32>
        %30 = arith.ori %26, %29 : vector<8x128xi1>
        %cst_15 = arith.constant 0.000000e+00 : f32
        %31 = vector.broadcast %cst_15 : f32 to vector<8x128xf32>
        %32 = arith.maximumf %16, %31 : vector<8x128xf32>
        %cst_16 = arith.constant 0.000000e+00 : f32
        %33 = vector.broadcast %cst_16 : f32 to vector<8x128xf32>
        %34 = arith.select %30, %16, %33 : vector<8x128xi1>, vector<8x128xf32>
        %35 = arith.subf %32, %34 : vector<8x128xf32>
        %36 = math.absf %16 : vector<8x128xf32>
        %cst_17 = arith.constant 0.000000e+00 : f32
        %37 = vector.broadcast %cst_17 : f32 to vector<8x128xf32>
        %38 = arith.subf %37, %36 : vector<8x128xf32>
        %39 = math.exp %38 : vector<8x128xf32>
        %40 = math.log1p %39 : vector<8x128xf32>
        %41 = arith.addf %35, %40 : vector<8x128xf32>
        %42 = arith.addf %12, %41 : vector<8x128xf32>
        %c0_18 = arith.constant 0 : index
        %c0_19 = arith.constant 0 : index
        %43 = vector.load %arg4[%c0_18, %c0_19] : memref<8x128xf32, #tpu.memory_space<vmem>>, vector<8x128xf32>
        tpu.vector_store %arg4[%c0_18, %c0_19], %42 {strides = array<i32>} : memref<8x128xf32, #tpu.memory_space<vmem>>, vector<8x128xf32>,
      }
      %c3_i32_10 = arith.constant 3 : i32
    } else {
    }
    %c1_i32_1 = arith.constant 1 : i32
    %5 = arith.cmpi eq, %arg0, %c1_i32_1 : i32
    %6 = arith.extui %5 : i1 to i32
    %c0_i32_2 = arith.constant 0 : i32
    %7 = arith.cmpi ne, %6, %c0_i32_2 : i32
    scf.if %7 {
      %c0_i32_8 = arith.constant 0 : i32
      %c2_i32 = arith.constant 2 : i32
      %11 = arith.addi %c0_i32_8, %c2_i32 : i32
      %c1_i32_9 = arith.constant 1 : i32
      scf.for %arg5 = %c0_i32_8 to %11 step %c1_i32_9  : i32 {
        %c0_11 = arith.constant 0 : index
        %c0_12 = arith.constant 0 : index
        %12 = vector.load %arg4[%c0_11, %c0_12] : memref<8x128xf32, #tpu.memory_space<vmem>>, vector<8x128xf32>
        %c8_i32 = arith.constant 8 : i32
        %13 = arith.muli %arg5, %c8_i32 : i32
        %14 = tpu.assume_multiple %13, 8 : i32
        %15 = arith.index_cast %14 : i32 to index
        %c0_13 = arith.constant 0 : index
        %16 = vector.load %arg1[%15, %c0_13] : memref<24x128xf32, #tpu.memory_space<vmem>>, vector<8x128xf32>
        %17 = arith.index_cast %14 : i32 to index
        %c0_14 = arith.constant 0 : index
        %18 = vector.load %arg2[%17, %c0_14] : memref<24x3xi32, #tpu.memory_space<vmem>>, vector<8x3xi32>
        %19 = tpu.iota {dimensions = array<i32: 1>} : vector<8x128xi32>
        %20 = vector.extract_strided_slice %18 {offsets = [0, 0], sizes = [8, 1], strides = [1, 1]} : vector<8x3xi32> to vector<8x1xi32>
        %21 = vector.broadcast %20 : vector<8x1xi32> to vector<8x128xi32>
        %22 = arith.cmpi eq, %19, %21 : vector<8x128xi32>
        %23 = vector.extract_strided_slice %18 {offsets = [0, 1], sizes = [8, 1], strides = [1, 1]} : vector<8x3xi32> to vector<8x1xi32>
        %24 = vector.broadcast %23 : vector<8x1xi32> to vector<8x128xi32>
        %25 = arith.cmpi eq, %19, %24 : vector<8x128xi32>
        %26 = arith.ori %22, %25 : vector<8x128xi1>
        %27 = vector.extract_strided_slice %18 {offsets = [0, 2], sizes = [8, 1], strides = [1, 1]} : vector<8x3xi32> to vector<8x1xi32>
        %28 = vector.broadcast %27 : vector<8x1xi32> to vector<8x128xi32>
        %29 = arith.cmpi eq, %19, %28 : vector<8x128xi32>
        %30 = arith.ori %26, %29 : vector<8x128xi1>
        %cst_15 = arith.constant 0.000000e+00 : f32
        %31 = vector.broadcast %cst_15 : f32 to vector<8x128xf32>
        %32 = arith.maximumf %16, %31 : vector<8x128xf32>
        %cst_16 = arith.constant 0.000000e+00 : f32
        %33 = vector.broadcast %cst_16 : f32 to vector<8x128xf32>
        %34 = arith.select %30, %16, %33 : vector<8x128xi1>, vector<8x128xf32>
        %35 = arith.subf %32, %34 : vector<8x128xf32>
        %36 = math.absf %16 : vector<8x128xf32>
        %cst_17 = arith.constant 0.000000e+00 : f32
        %37 = vector.broadcast %cst_17 : f32 to vector<8x128xf32>
        %38 = arith.subf %37, %36 : vector<8x128xf32>
        %39 = math.exp %38 : vector<8x128xf32>
        %40 = math.log1p %39 : vector<8x128xf32>
        %41 = arith.addf %35, %40 : vector<8x128xf32>
        %42 = arith.addf %12, %41 : vector<8x128xf32>
        %c0_18 = arith.constant 0 : index
        %c0_19 = arith.constant 0 : index
        %43 = vector.load %arg4[%c0_18, %c0_19] : memref<8x128xf32, #tpu.memory_space<vmem>>, vector<8x128xf32>
        tpu.vector_store %arg4[%c0_18, %c0_19], %42 {strides = array<i32>} : memref<8x128xf32, #tpu.memory_space<vmem>>, vector<8x128xf32>,
      }
      %c2_i32_10 = arith.constant 2 : i32
    } else {
    }
    %c0_3 = arith.constant 0 : index
    %c0_4 = arith.constant 0 : index
    %8 = vector.load %arg4[%c0_3, %c0_4] : memref<8x128xf32, #tpu.memory_space<vmem>>, vector<8x128xf32>
    %9 = vector.shape_cast %8 : vector<8x128xf32> to vector<1x8x128xf32>
    %c0_5 = arith.constant 0 : index
    %c0_6 = arith.constant 0 : index
    %c0_7 = arith.constant 0 : index
    %10 = vector.load %arg3[%c0_5, %c0_6, %c0_7] : memref<1x8x128xf32, #tpu.memory_space<vmem>>, vector<1x8x128xf32>
    tpu.vector_store %arg3[%c0_5, %c0_6, %c0_7], %9 {strides = array<i32>} : memref<1x8x128xf32, #tpu.memory_space<vmem>>, vector<1x8x128xf32>,
    return
  }
  func.func @transform_0(%arg0: i32) -> (i32, i32) {
    %c0_i32 = arith.constant 0 : i32
    %c0_i32_0 = arith.constant 0 : i32
    return %arg0, %c0_i32 : i32, i32
  }
  func.func @transform_1(%arg0: i32) -> (i32, i32) {
    %c0_i32 = arith.constant 0 : i32
    %c0_i32_0 = arith.constant 0 : i32
    return %arg0, %c0_i32 : i32, i32
  }
  func.func @transform_2(%arg0: i32) -> (i32, i32, i32) {
    %c0_i32 = arith.constant 0 : i32
    %c0_i32_0 = arith.constant 0 : i32
    %c0_i32_1 = arith.constant 0 : i32
    return %arg0, %c0_i32, %c0_i32_0 : i32, i32, i32
  }
}

</mosaic_0001>

<bundles_post_ra>
// kernel: tpu_custom_call.1
= control target key start
LH: loop header
LB: loop body
LE: loop exit
PB: predicated region body
PF: predicated region fallthrough
CT: control target
= control target key end

     0   :  { %7 = vsyncpa [#allocation4], 0  ;;  %s736_s0 = inlined_call_operand.vmem [shape: f32[40,128], index: 0, kind: input, shape index: {}]   ;;  %s737_s1 = inlined_call_operand.vmem [shape: s32[40,3], index: 1, kind: input, shape index: {}]   ;;  %s738_s2 = inlined_call_operand.hbm [shape: f32[2,8,128], index: 2, kind: output, shape index: {}]  }
   0x1   :  { %9 = vsyncpa [#allocation4 + $0x1], 0  ;;  %s608_s9 = smov 0   ;;  %s610_s10 = smov 0  }
   0x2   :  { %s612_s11 = smov 0   ;;  %s614_s12 = smov 0  }
   0x3 LB: > { %s629_s13 = sadd.s32 4294967295, %s575_s12   ;;  %s414_s14 = sadd.s32 4294967294, %s575_s12   ;;  %s575_s12 = sphi %s614_s12, %s744_s12   ;;  %s571_s11 = sphi %s612_s11, %s743_s11   ;;  %s567_s10 = sphi %s610_s10, %s742_s10   ;;  %s563_s9 = sphi %s608_s9, %s741_s9  }
   0x4   : > { %s633_s15 = sadd.s32 1, %s575_s12   ;;  %s74_s16 = sadd.s32 1, %s571_s11 }
   0x5   : > { %s71_s17 = ssub.s32 %s575_s12, %s633_s15  ;;  %p84_p0 = scmp.ne.s32.totalorder %s571_s11, %s567_s10 }
   0x6   : > { %p72_p1 = scmp.eq.s32.totalorder %s71_s17, 0  ;;  %p85_p2 = scmp.eq.s32.totalorder %s629_s13, 1 }
   0x7   : > { %p90_p3 = scmp.ne.s32.totalorder %s567_s10, %s563_s9  ;;  %p91_p4 = scmp.eq.s32.totalorder %s414_s14, 1 }
   0x8   : > { %s644_s18 = scalar_select %p72_p1, %s571_s11, %s74_s16  }
   0x9   : > { %p646_p5 = por %p85_p2, %p84_p0  ;;  %p650_p6 = por %p91_p4, %p90_p3 }
   0xa   : > { %p417_p7 = scmp.ge.s32.totalorder %s575_s12, 1  ;;  %p143_p8 = scmp.lt.s32.totalorder %s575_s12, 3 }
   0xc   : > { %p144_p9 = pnand %p417_p7, %p143_p8 }
   0xd   : > { %s175_s21 = sand.u32 (!%p144_p9), 1, %s567_s10   ;;  %s178_s22 = smul.u32 (!%p144_p9), 3, %s629_s13 }
   0xe   : > { %147 = sbr.rel (%p144_p9) target bundleno = 340 (0x154), region = 28  ;;  %s660_s23 = sshll.u32 (!%p144_p9), %s175_s21, 3 }
   0xf   : > { %p183_p10 = scmp.lt.s32.totalorder (!%p144_p9), %s178_s22, 4  ;;  %s177_s3 = scalar_lea.vmem (!%p144_p9), [#allocation3], %s660_s23 }
  0x10   : > { %p421_p11 = scmp.ge.s32.totalorder (!%p144_p9), %s629_s13, 1 }
  0x13   : > { %v585_v0 = vmov 0.0   ;;  %s746_s22 = smov (!%p183_p10, %s178_s22), 4  ;;  %210 = sbr.rel (%p421_p11) target bundleno = 167 (0xa7), region = 32 }
  0x14   : > { %206 = vst [vmem:[#allocation2] sm:$0xff] %v585_v0  ;;  %s419_s24 = sshll.u32 %s746_s22, 3  ;;  %s674_s4 = smov (!%p421_p11), 0  }
  0x15   : > { %s665_s27 = scalar_lea.vmem %s736_s0, %s419_s24  ;;  %s670_s30 = scalar_lea.vmem %s737_s1, %s419_s24 }
  0x18 LB: >> { %v586_v1 = vmov 0   ;;  %v587_v2 = vmov 2   ;;  %s422_s5 = sshll.u32 %s579_s4, 3  ;;  %v588_v4 = vmov 1   ;;  %v223_v12 = vlaneseq  ;;  %s216_s4 = sadd.s32 1, %s579_s4   ;;  %s579_s4 = sphi %s674_s4, %s216_s4  }
  0x19   : >> { %491 = vset.pattern.permute.xlu0 %v586_v1  ;;  %493 = vset.pattern.permute.xlu1 %v587_v2  ;;  %s221_s6 = scalar_lea.vmem %s670_s30, %s422_s5  ;;  %s219_s7 = scalar_lea.vmem %s665_s27, %s422_s5 }
  0x1a   : >> { %v222_v3 = vld [vmem:[%s221_s6] sm:$0xff]  ;;  %v224_v16 = vand.u32 127, %v223_v12  ;;  %p213_p12 = scmp.ge.s32.totalorder %s216_s4, 3  }
  0x1b   : >> { %226 = vperm.xlu0 %491, %v222_v3   ;;  %235 = vperm.xlu1 %493, %v222_v3   ;;  %v220_v5 = vld [vmem:[%s219_s7] sm:$0xff] }
  0x1c   : >> { %v242_v6 = vand.u32 2147483647, %v220_v5  ;;  %v239_v22 = vmax.f32 %v220_v5, 0.0  ;;  %v217_v26 = vld [vmem:[#allocation2] sm:$0xff] }
  0x1e   : >> { %v243_v7 = vsub.f32 0.0, %v242_v6 }
  0x1f   : >> { %492 = vset.pattern.permute.xlu0 %v588_v4 }
  0x20   : >> { %230 = vperm.xlu0 %492, %v222_v3   ;;  %v244_v8 = vmul.f32 1.442695, %v243_v7 }
  0x22   : >> { %495 = vpow2.f32 %v244_v8 }
  0x24   : >> { %494 = vset.pattern.permute.xlu0 %v587_v2 }
  0x2f   : >> { %v496_v9 = vpop.eup %495 }
  0x30   : >> { %v246_v10 = vadd.f32 1.0, %v496_v9  ;;  %v249_v11 = vmul.f32 -0.5, %v496_v9  ;;  %v252_v18 = vand.u32 2147483647, %v496_v9 }
  0x32   : >> { %497 = vlog2.f32 %v246_v10  ;;  %v250_v14 = vadd.f32 1.0, %v249_v11  ;;  %vm253_vm3 = vcmp.lt.f32.partialorder %v252_v18, 0.0004427343 }
  0x34   : >> { %v251_v21 = vmul.f32 %v496_v9, %v250_v14 }
  0x3f   : >> { %v498_v15 = vpop.eup %497 }
  0x40   : >> { %v248_v20 = vmul.f32 0.6931472, %v498_v15 }
  0x42   : >> { %v254_v24 = vsel %vm253_vm3, %v251_v21, %v248_v20 }
  0x96   : >> { %v227_v13 = vpop.permute.xlu0 %226  ;;  %v236_v17 = vpop.permute.xlu1 %235 }
  0x97   : >> { %vm237_vm0 = vcmp.eq.s32.totalorder %v224_v16, %v236_v17  ;;  %vm228_vm1 = vcmp.eq.s32.totalorder %v224_v16, %v227_v13 }
  0x9b   : >> { %v231_v19 = vpop.permute.xlu0 %230 }
  0x9c   : >> { %vm232_vm2 = vcmp.eq.s32.totalorder %v224_v16, %v231_v19 }
  0x9d   : >> { %vm233_vm4 = vmor %vm228_vm1, %vm232_vm2 }
  0x9e   : >> { %vm238_vm5 = vmor %vm233_vm4, %vm237_vm0 }
  0x9f   : >> { %v240_v23 = vsel %vm238_vm5, %v220_v5, 0.0 }
  0xa0   : >> { %v241_v25 = vsub.f32 %v239_v22, %v240_v23 }
  0xa2   : >> { %v255_v27 = vadd.f32 %v254_v24, %v241_v25  ;;  %215 = sbr.rel (!%p213_p12) target bundleno = 24 (0x18), region = 92 }
  0xa4   : >> { %v256_v28 = vadd.f32 %v255_v27, %v217_v26 }
  0xa6   : >> { %257 = vst [vmem:[#allocation2] sm:$0xff] %v256_v28 }
  0xa7 PF: > { %p423_p13 = scmp.ne.s32.totalorder %s629_s13, 1 }
  0xa8   : > { %s686_s8 = smov (!%p423_p13), 0  }
  0xa9   : > { %261 = sbr.rel (%p423_p13) target bundleno = 317 (0x13d), region = 43 }
  0xae LB: >> { %v589_v29 = vmov 0   ;;  %v590_v30 = vmov 2   ;;  %s424_s14 = sshll.u32 %s583_s8, 3  ;;  %v591_v32 = vmov 1   ;;  %v274_v40 = vlaneseq  ;;  %v268_v54 = vld [vmem:[#allocation2] sm:$0xff]  ;;  %s267_s8 = sadd.s32 1, %s583_s8   ;;  %s583_s8 = sphi %s686_s8, %s267_s8  }
  0xaf   : >> { %499 = vset.pattern.permute.xlu0 %v589_v29  ;;  %501 = vset.pattern.permute.xlu1 %v590_v30  ;;  %s272_s16 = scalar_lea.vmem %s670_s30, %s424_s14  ;;  %s270_s17 = scalar_lea.vmem %s665_s27, %s424_s14 }
  0xb0   : >> { %v273_v31 = vld [vmem:[%s272_s16] sm:$0xff]  ;;  %v275_v44 = vand.u32 127, %v274_v40  ;;  %p264_p0 = scmp.ge.s32.totalorder %s267_s8, 2  }
  0xb1   : >> { %277 = vperm.xlu0 %499, %v273_v31   ;;  %286 = vperm.xlu1 %501, %v273_v31   ;;  %v271_v33 = vld [vmem:[%s270_s17] sm:$0xff] }
  0xb2   : >> { %v293_v34 = vand.u32 2147483647, %v271_v33  ;;  %v290_v50 = vmax.f32 %v271_v33, 0.0 }
  0xb4   : >> { %v294_v35 = vsub.f32 0.0, %v293_v34 }
  0xb5   : >> { %500 = vset.pattern.permute.xlu0 %v591_v32 }
  0xb6   : >> { %281 = vperm.xlu0 %500, %v273_v31   ;;  %v295_v36 = vmul.f32 1.442695, %v294_v35 }
  0xb8   : >> { %503 = vpow2.f32 %v295_v36 }
  0xba   : >> { %502 = vset.pattern.permute.xlu0 %v590_v30 }
  0xc5   : >> { %v504_v37 = vpop.eup %503 }
  0xc6   : >> { %v297_v38 = vadd.f32 1.0, %v504_v37  ;;  %v300_v39 = vmul.f32 -0.5, %v504_v37  ;;  %v303_v46 = vand.u32 2147483647, %v504_v37 }
  0xc8   : >> { %505 = vlog2.f32 %v297_v38  ;;  %v301_v42 = vadd.f32 1.0, %v300_v39  ;;  %vm304_vm9 = vcmp.lt.f32.partialorder %v303_v46, 0.0004427343 }
  0xca   : >> { %v302_v49 = vmul.f32 %v504_v37, %v301_v42 }
  0xd5   : >> { %v506_v43 = vpop.eup %505 }
  0xd6   : >> { %v299_v48 = vmul.f32 0.6931472, %v506_v43 }
  0xd8   : >> { %v305_v52 = vsel %vm304_vm9, %v302_v49, %v299_v48 }
 0x12c   : >> { %v278_v41 = vpop.permute.xlu0 %277  ;;  %v287_v45 = vpop.permute.xlu1 %286 }
 0x12d   : >> { %vm288_vm6 = vcmp.eq.s32.totalorder %v275_v44, %v287_v45  ;;  %vm279_vm7 = vcmp.eq.s32.totalorder %v275_v44, %v278_v41 }
 0x131   : >> { %v282_v47 = vpop.permute.xlu0 %281 }
 0x132   : >> { %vm283_vm8 = vcmp.eq.s32.totalorder %v275_v44, %v282_v47 }
 0x133   : >> { %vm284_vm10 = vmor %vm279_vm7, %vm283_vm8 }
 0x134   : >> { %vm289_vm11 = vmor %vm284_vm10, %vm288_vm6 }
 0x135   : >> { %v291_v51 = vsel %vm289_vm11, %v271_v33, 0.0 }
 0x136   : >> { %v292_v53 = vsub.f32 %v290_v50, %v291_v51 }
 0x138   : >> { %v306_v55 = vadd.f32 %v305_v52, %v292_v53  ;;  %266 = sbr.rel (!%p264_p0) target bundleno = 174 (0xae), region = 103 }
 0x13a   : >> { %v307_v56 = vadd.f32 %v306_v55, %v268_v54 }
 0x13c   : >> { %308 = vst [vmem:[#allocation2] sm:$0xff] %v307_v56 }
 0x13d PF: > { %s426_s22 = sshll.u32 %s629_s13, 7  ;;  %s325_s28 = sshll.u32 %s177_s3, 4  ;;  %s326_s28 = int_to_ptr.vmem [resolvable:$true] %s325_s28 }
 0x13e   : > { %s323_s26 = scalar_lea.hbm %s738_s2, %s426_s22  ;;  %s312_s29 = scalar_lea.sflag [#allocation4], %s175_s21 }
 0x13f   : > { %s507_s4 = scalar_lea.vmem %s326_s28, 128  ;;  %s592_s27 = smov [#allocation3]  }
 0x140   : > { %p508_p1 = scmp.ne.s32.totalorder %s326_s28, %s507_s4  ;;  %s511_s30 = sshll.u32 %s592_s27, 4  ;;  %s512_s30 = int_to_ptr.vmem [resolvable:$false] %s511_s30 }
 0x141   : > { %s513_s13 = scalar_lea.vmem %s512_s30, 256  ;;  %p514_p4 = scmp.lt.s32.totalorder %s326_s28, %s512_s30 }
 0x142   : > { %p509_p2 = pnand %p508_p1, %p646_p5  ;;  %p515_p7 = scmp.lt.s32.totalorder %s513_s13, %s507_s4 }
 0x143   : > { %v309_v57 = vld [vmem:[#allocation2] sm:$0xff] }
 0x144   : > { %310 = vst [vmem:[%s177_s3] sm:$0xff] %v309_v57  ;;  %p510_p3 = pneg %p509_p2  ;;  %p516_p8 = por %p515_p7, %p514_p4 }
 0x146   : > { %p517_p9 = pnand %p516_p8, %p510_p3 }
 0x148   : > { %520 = shalt.err (!%p517_p9)
}
 0x149   : > { %s521_s5 = scalar_lea.hbm %s323_s26, 128  ;;  %s525_s3 = scalar_lea.hbm %s738_s2, 256 }
 0x14a   : > { %p522_p10 = scmp.ne.s32.totalorder %s323_s26, %s521_s5  ;;  %p526_p13 = scmp.lt.s32.totalorder %s323_s26, %s738_s2 }
 0x14b   : > { %p527_p0 = scmp.lt.s32.totalorder %s525_s3, %s521_s5 }
 0x14c   : > { %p523_p11 = pnand %p522_p10, %p646_p5 }
 0x14d   : > { %p528_p1 = por %p527_p0, %p526_p13 }
 0x14e   : > { %p524_p12 = pneg %p523_p11 }
 0x150   : > { %p529_p2 = pnand %p528_p1, %p524_p12 }
 0x152   : > { %532 = shalt.err (!%p529_p2)
}
 0x153   : > { %429 = dma.vmem_to_hbm [thread:$0]  (%p646_p5), %s326_s28, 128, %s323_s26, %s312_s29  }
 0x154 PF: > { %p435_p3 = scmp.ge.s32.totalorder %s575_s12, 2  ;;  %s337_s8 = sand.u32 1, %s563_s9  }
 0x155   : > { %s338_s14 = scalar_lea.sflag [#allocation4], %s337_s8 }
 0x156   : > { %p432_p4 = pnand %p435_p3, %p650_p6 }
 0x158   : > { %p433_p7 = pneg %p432_p4 }
 0x15a   : > { %558 = dma.done.wait (%p433_p7), %s338_s14, 128  }
 0x15b   : > { %560 = vsyncadd (%p433_p7), %s338_s14, 4294967168  ;;  %p12_p8 = scmp.ge.s32.totalorder %s633_s15, 4   ;;  %s741_s9 = smov %s567_s10 }
 0x15c   : > { %s742_s10 = smov %s571_s11  ;;  %s743_s11 = smov %s644_s18 }
 0x15d   : > { %s744_s12 = smov %s633_s15  ;;  %14 = sbr.rel (!%p12_p8) target bundleno = 3 (0x3), region = 114 }
 0x162   :  { %343 = vsyncpa [#allocation4], 1 }
 0x163   :  { %345 = vsyncpa [#allocation4 + $0x1], 1 }

</bundles_post_ra>
